<compile_context>
chip_gen: v6e
topology: v6e:2x2x1
jax: 0.10.0
libtpu: 0.0.40
codegen_flags: <defaults>
</compile_context>

<pallas_src>
import jax
import jax.numpy as jnp
from jax.experimental import pallas as pl
from jax.experimental.pallas import tpu as pltpu

BN_EPS = 1e-5
_K_SINGLE_BLOCK_MAX = 2048   # single K block (no accumulator) when Cin pads to <= this


# --------------------------------------------------------------------------- #
# Tile selection helpers
# --------------------------------------------------------------------------- #
def _round_up(v, m):
    return ((v + m - 1) // m) * m


def _largest_divisor_tile(dim, preferred, align):
    """Largest multiple of `align` dividing `dim` (a multiple of align), <= preferred."""
    t = min(preferred, dim)
    t -= t % align
    while t > align:
        if dim % t == 0:
            return t
        t -= align
    return align


def _pick_m_tile(n, preferred, align=8, max_waste_frac=0.125):
    """(tile, padded_n): tile is a multiple of align, divides padded_n, waste bounded."""
    d_min = _round_up(n, align)
    if d_min <= preferred:
        return d_min, d_min
    budget = max(align, int(max_waste_frac * d_min))
    t = preferred - preferred % align
    while t > align:
        p = _round_up(n, t)
        if p - d_min <= budget:
            return t, p
        t -= align
    return align, d_min


def _select_tiles(n, kp, np_):
    """Choose (tm, mp, tn, tk) for x:(n,.)->padded (mp,kp), W:(kp,np_)."""
    if kp <= _K_SINGLE_BLOCK_MAX:
        tk = kp                                   # single K block -> no accumulator
    else:
        tk = _largest_divisor_tile(kp, 1024, 128)
    tn = _largest_divisor_tile(np_, 256, 128)
    # Keep double-buffered x/w/out comfortably under the 16 MiB v5e scoped VMEM.
    preferred_m = 512 if tk <= 1024 else 256
    tm, mp = _pick_m_tile(n, preferred_m)
    # v7x: 2 TensorCores share the grid -> expose >= 2 'parallel' blocks if possible.
    if (mp // tm) * (np_ // tn) == 1:
        if np_ >= 256:
            tn = 128
        elif mp >= 16:
            mp = _round_up(n, 16)
            tm = mp // 2
    return tm, mp, tn, tk


# --------------------------------------------------------------------------- #
# Kernels
# --------------------------------------------------------------------------- #
def _gemm_bias_kernel(x_ref, scale_ref, w_ref, b_ref, o_ref):
    """Single-K-block path: o = (x * scale) @ w + b (bf16 MXU, f32 accumulate)."""
    xb = (x_ref[...] * scale_ref[...]).astype(jnp.bfloat16)
    o_ref[...] = (
        jnp.dot(xb, w_ref[...], preferred_element_type=jnp.float32) + b_ref[...]
    ).astype(o_ref.dtype)


def _gemm_bias_acc_kernel(x_ref, scale_ref, w_ref, b_ref, o_ref, acc_ref):
    """K-tiled path: accumulator initialized with the broadcast bias at k == 0."""
    k = pl.program_id(2)

    @pl.when(k == 0)
    def _():
        acc_ref[...] = jnp.zeros_like(acc_ref) + b_ref[...]

    xb = (x_ref[...] * scale_ref[...]).astype(jnp.bfloat16)
    acc_ref[...] += jnp.dot(xb, w_ref[...], preferred_element_type=jnp.float32)

    @pl.when(k == pl.num_programs(2) - 1)
    def _():
        o_ref[...] = acc_ref[...].astype(o_ref.dtype)


def _scaled_linear(x_p, scale_p, w_p, bias_p, out_dtype, tm, tn, tk):
    """y = (x * scale) @ W + bias over a (M, N[, K]) grid."""
    mp, kp = x_p.shape
    np_ = w_p.shape[1]
    nk = kp // tk

    if nk == 1:
        return pl.pallas_call(
            _gemm_bias_kernel,
            out_shape=jax.ShapeDtypeStruct((mp, np_), out_dtype),
            grid_spec=pltpu.PrefetchScalarGridSpec(
                num_scalar_prefetch=0,
                grid=(mp // tm, np_ // tn),
                in_specs=[
                    pl.BlockSpec((tm, kp), lambda i, j: (i, 0)),   # x (f32)
                    pl.BlockSpec((1, kp), lambda i, j: (0, 0)),    # BN scale
                    pl.BlockSpec((kp, tn), lambda i, j: (0, j)),   # W (bf16)
                    pl.BlockSpec((1, tn), lambda i, j: (0, j)),    # bias
                ],
                out_specs=pl.BlockSpec((tm, tn), lambda i, j: (i, j)),
            ),
            compiler_params=pltpu.CompilerParams(
                dimension_semantics=("parallel", "parallel"),
            ),
        )(x_p, scale_p, w_p, bias_p)

    return pl.pallas_call(
        _gemm_bias_acc_kernel,
        out_shape=jax.ShapeDtypeStruct((mp, np_), out_dtype),
        grid_spec=pltpu.PrefetchScalarGridSpec(
            num_scalar_prefetch=0,
            grid=(mp // tm, np_ // tn, nk),
            in_specs=[
                pl.BlockSpec((tm, tk), lambda i, j, k: (i, k)),
                pl.BlockSpec((1, tk), lambda i, j, k: (0, k)),
                pl.BlockSpec((tk, tn), lambda i, j, k: (k, j)),
                pl.BlockSpec((1, tn), lambda i, j, k: (0, j)),
            ],
            out_specs=pl.BlockSpec((tm, tn), lambda i, j, k: (i, j)),
            scratch_shapes=[pltpu.VMEM((tm, tn), jnp.float32)],
        ),
        compiler_params=pltpu.CompilerParams(
            dimension_semantics=("parallel", "parallel", "arbitrary"),
        ),
    )(x_p, scale_p, w_p, bias_p)


# --------------------------------------------------------------------------- #
# Module wrapper
# --------------------------------------------------------------------------- #
def init_params(key, input_size, output_size, batch_norm=True):
    kw, kb = jax.random.split(key)
    bound = 1.0 / jnp.sqrt(input_size)
    # nn.Linear stores weight as (out, in); we keep the transpose (in, out).
    w = jax.random.uniform(kw, (input_size, output_size), jnp.float32, -bound, bound)
    b = jax.random.uniform(kb, (1, output_size), jnp.float32, -bound, bound)
    params = {"w": w, "b": b}
    if batch_norm:
        # torch BatchNorm1d init: weight (gamma)=1, bias (beta)=0
        params["gamma"] = jnp.ones((1, input_size), jnp.float32)
        params["beta"] = jnp.zeros((1, input_size), jnp.float32)
    return params


def prepare_params(params):
    """One-time: pad W / bias to 128-multiples and cast W to bf16 for the MXU."""
    w = params["w"].astype(jnp.float32)
    b = jnp.reshape(params["b"], (1, -1)).astype(jnp.float32)
    cin, cout = w.shape
    kp, np_ = _round_up(cin, 128), _round_up(cout, 128)
    prepared = dict(params)
    prepared["w_p"] = (
        jnp.zeros((kp, np_), jnp.bfloat16).at[:cin, :cout].set(w.astype(jnp.bfloat16))
    )
    prepared["b_p"] = jnp.zeros((1, np_), jnp.float32).at[:, :cout].set(b)
    return prepared


def custom_head_forward(x, params, *, batch_norm=True):
    """CustomHead.forward: optional BatchNorm1d (training-mode batch stats) + Linear."""
    x = x.astype(jnp.float32)
    n, cin = x.shape
    w_p, b_p = params["w_p"], params["b_p"]
    kp, np_ = w_p.shape
    cout = params["w"].shape[1]

    if batch_norm:
        # Two-pass batch statistics (biased variance), like torch training-mode BN.
        mean = jnp.mean(x, axis=0, keepdims=True)
        var = jnp.mean(jnp.square(x - mean), axis=0, keepdims=True)
        scale = params["gamma"].reshape(1, -1) * jax.lax.rsqrt(var + BN_EPS)
        shift = params["beta"].reshape(1, -1) - mean * scale              # (1, Cin)
        # Cheap bias fold stays in the wrapper; the per-feature scale is applied
        # to the x tile inside the kernel (no per-call rebuild of W * scale).
        bias_p = b_p.at[:, :cout].add(shift @ params["w"])
        scale_p = jnp.zeros((1, kp), jnp.float32).at[:, :cin].set(scale)
        # TODO(synk): eval-mode BN (running_mean/running_var) folds identically
        # using stored statistics; running-stat tracking itself is training state.
    else:
        bias_p = b_p
        scale_p = jnp.zeros((1, kp), jnp.float32).at[:, :cin].set(1.0)

    tm, mp, tn, tk = _select_tiles(n, kp, np_)

    if (n, cin) == (mp, kp):
        x_p = x                                    # no copy when already aligned
    else:
        x_p = jnp.zeros((mp, kp), jnp.float32).at[:n, :cin].set(x)

    out = _scaled_linear(x_p, scale_p, w_p, bias_p, x.dtype, tm, tn, tk)
    return out[:n, :cout]


# --------------------------------------------------------------------------- #
# Reference + tests
# --------------------------------------------------------------------------- #
def _reference(x, params, batch_norm):
    x = x.astype(jnp.float32)
    if batch_norm:
        mean = jnp.mean(x, axis=0, keepdims=True)
        var = jnp.mean((x - mean) ** 2, axis=0, keepdims=True)
        x = (x - mean) / jnp.sqrt(var + BN_EPS) * params["gamma"] + params["beta"]
    return x @ params["w"] + params["b"]


if __name__ == "__main__":
    key = jax.random.PRNGKey(0)

    # --- small shapes matching the module (single-tile grid) -----------------
    batch, input_size, output_size = 8, 32, 16
    key_x, key_p, key = jax.random.split(key, 3)
    x = jax.random.normal(key_x, (batch, input_size), jnp.float32)
    params = prepare_params(init_params(key_p, input_size, output_size, batch_norm=True))

    out = jax.block_until_ready(custom_head_forward(x, params, batch_norm=True))
    assert out.shape == (batch, output_size)
    assert jnp.allclose(out, _reference(x, params, True), atol=5e-2, rtol=5e-2), \
        "BN+Linear mismatch"

    out2 = jax.block_until_ready(custom_head_forward(x, params, batch_norm=False))
    assert jnp.allclose(out2, _reference(x, params, False), atol=5e-2, rtol=5e-2), \
        "Linear-only mismatch"

    # --- padding + multi-block parallel grid (single-K-block fast path) ------
    n2, cin2, cout2 = 300, 520, 200
    key_x2, key_p2, key = jax.random.split(key, 3)
    x2 = jax.random.normal(key_x2, (n2, cin2), jnp.float32)
    params2 = prepare_params(init_params(key_p2, cin2, cout2, batch_norm=True))
    out3 = jax.block_until_ready(custom_head_forward(x2, params2, batch_norm=True))
    assert out3.shape == (n2, cout2)
    assert jnp.allclose(out3, _reference(x2, params2, True), atol=5e-2, rtol=5e-2), \
        "padded BN+Linear mismatch"

    # --- large Cin: exercises the K-tiled accumulator path -------------------
    n3, cin3, cout3 = 64, 2688, 96
    key_x3, key_p3 = jax.random.split(key)
    x3 = jax.random.normal(key_x3, (n3, cin3), jnp.float32)
    params3 = prepare_params(init_params(key_p3, cin3, cout3, batch_norm=True))
    out4 = jax.block_until_ready(custom_head_forward(x3, params3, batch_norm=True))
    assert out4.shape == (n3, cout3)
    assert jnp.allclose(out4, _reference(x3, params3, True), atol=5e-2, rtol=5e-2), \
        "K-tiled BN+Linear mismatch"

    print("KERNEL_OK")
</pallas_src>

<mosaic_0001>
module attributes {stable_mosaic.version = 11 : i64} {
  func.func @_gemm_bias_kernel(%arg0: i32, %arg1: i32, %arg2: memref<8x128xf32, #tpu.memory_space<vmem>>, %arg3: memref<1x128xf32, #tpu.memory_space<vmem>>, %arg4: memref<128x128xbf16, #tpu.memory_space<vmem>>, %arg5: memref<1x128xf32, #tpu.memory_space<vmem>>, %arg6: memref<8x128xf32, #tpu.memory_space<vmem>>) attributes {dimension_semantics = [#tpu.dimension_semantics<parallel>, #tpu.dimension_semantics<parallel>], iteration_bounds = array<i64: 1, 1>, scalar_prefetch = 0 : i64, scratch_operands = 0 : i64, tpu.core_type = #tpu.core_type<tc>, window_params = [{transform_indices = @transform_0, window_bounds = array<i64: 8, 128>}, {pipeline_mode = #tpu.pipeline_mode<synchronous>, transform_indices = @transform_1, window_bounds = array<i64: 1, 128>}, {transform_indices = @transform_2, window_bounds = array<i64: 128, 128>}, {transform_indices = @transform_3, window_bounds = array<i64: 1, 128>}, {transform_indices = @transform_4, window_bounds = array<i64: 8, 128>}]} {
    %c0 = arith.constant 0 : index
    %c0_0 = arith.constant 0 : index
    %0 = vector.load %arg2[%c0, %c0_0] : memref<8x128xf32, #tpu.memory_space<vmem>>, vector<8x128xf32>
    %c0_1 = arith.constant 0 : index
    %c0_2 = arith.constant 0 : index
    %1 = vector.load %arg3[%c0_1, %c0_2] : memref<1x128xf32, #tpu.memory_space<vmem>>, vector<1x128xf32>
    %2 = vector.broadcast %1 : vector<1x128xf32> to vector<8x128xf32>
    %3 = arith.mulf %0, %2 : vector<8x128xf32>
    %4 = arith.truncf %3 : vector<8x128xf32> to vector<8x128xbf16>
    %c0_3 = arith.constant 0 : index
    %c0_4 = arith.constant 0 : index
    %5 = vector.load %arg4[%c0_3, %c0_4] : memref<128x128xbf16, #tpu.memory_space<vmem>>, vector<128x128xbf16>
    %cst = arith.constant dense<0.000000e+00> : vector<8x128xf32>
    %6 = tpu.matmul %4, %5, %cst {dimension_numbers = #tpu.dot_dimension_numbers<[1], [0], [0], [1], [0, 0, 1, 1], [], []>} : vector<8x128xbf16>, vector<128x128xbf16>, vector<8x128xf32> -> vector<8x128xf32>
    %c0_5 = arith.constant 0 : index
    %c0_6 = arith.constant 0 : index
    %7 = vector.load %arg5[%c0_5, %c0_6] : memref<1x128xf32, #tpu.memory_space<vmem>>, vector<1x128xf32>
    %8 = vector.broadcast %7 : vector<1x128xf32> to vector<8x128xf32>
    %9 = arith.addf %6, %8 : vector<8x128xf32>
    %c0_7 = arith.constant 0 : index
    %c0_8 = arith.constant 0 : index
    %10 = vector.load %arg6[%c0_7, %c0_8] : memref<8x128xf32, #tpu.memory_space<vmem>>, vector<8x128xf32>
    tpu.vector_store %arg6[%c0_7, %c0_8], %9 {strides = array<i32>} : memref<8x128xf32, #tpu.memory_space<vmem>>, vector<8x128xf32>,
    return
  }
  func.func @transform_0(%arg0: i32, %arg1: i32) -> (i32, i32) {
    %c0_i32 = arith.constant 0 : i32
    %c0_i32_0 = arith.constant 0 : i32
    return %arg0, %c0_i32 : i32, i32
  }
  func.func @transform_1(%arg0: i32, %arg1: i32) -> (i32, i32) {
    %c0_i32 = arith.constant 0 : i32
    %c0_i32_0 = arith.constant 0 : i32
    %c0_i32_1 = arith.constant 0 : i32
    return %c0_i32, %c0_i32_0 : i32, i32
  }
  func.func @transform_2(%arg0: i32, %arg1: i32) -> (i32, i32) {
    %c0_i32 = arith.constant 0 : i32
    %c0_i32_0 = arith.constant 0 : i32
    return %c0_i32, %arg1 : i32, i32
  }
  func.func @transform_3(%arg0: i32, %arg1: i32) -> (i32, i32) {
    %c0_i32 = arith.constant 0 : i32
    %c0_i32_0 = arith.constant 0 : i32
    return %c0_i32, %arg1 : i32, i32
  }
  func.func @transform_4(%arg0: i32, %arg1: i32) -> (i32, i32) {
    %c0_i32 = arith.constant 0 : i32
    return %arg0, %arg1 : i32, i32
  }
}

</mosaic_0001>

<bundles_post_ra>
// kernel: tpu_custom_call.1
= control target key start
LH: loop header
LB: loop body
LE: loop exit
PB: predicated region body
PF: predicated region fallthrough
CT: control target
= control target key end

     0   :  { %9 = vsyncpa [#allocation3], 0  ;;  %s350_s0 = inlined_call_operand.hbm [shape: f32[8,128], index: 0, kind: input, shape index: {}]   ;;  %s351_s1 = inlined_call_operand.vmem [shape: f32[1,128], index: 1, kind: input, shape index: {}]   ;;  %s352_s2 = inlined_call_operand.hbm [shape: bf16[128,128], index: 2, kind: input, shape index: {}]   ;;  %s353_s3 = inlined_call_operand.vmem [shape: f32[1,128], index: 3, kind: input, shape index: {}]   ;;  %s354_s4 = inlined_call_operand.hbm [shape: f32[8,128], index: 4, kind: output, shape index: {}]  }
   0x1   :  { %10 = vsyncpa [#allocation6], 0 }
   0x2   :  { %11 = vsyncpa [#allocation4], 0  ;;  %s303_s15 = smov [#allocation2]   ;;  %s304_s17 = smov [#allocation5]  }
   0x3   :  { %s18_s16 = sshll.u32 %s303_s15, 4  ;;  %s29_s18 = sshll.u32 %s304_s17, 4  ;;  %s19_s16 = int_to_ptr.vmem [resolvable:$true] %s18_s16  ;;  %s30_s18 = int_to_ptr.vmem [resolvable:$true] %s29_s18 }
   0x4   :  { %s245_s19 = scalar_lea.vmem %s19_s16, 128  ;;  %p250_p1 = scmp.lt.s32.totalorder %s19_s16, %s19_s16 }
   0x5   :  { %p246_p0 = scmp.ne.s32.totalorder %s19_s16, %s245_s19  ;;  %p251_p2 = scmp.lt.s32.totalorder %s245_s19, %s245_s19 }
   0x7   :  { %p252_p3 = por %p251_p2, %p250_p1 }
   0x9   :  { %p253_p4 = pnand %p252_p3, %p246_p0 }
   0xb   :  { %256 = shalt.err (!%p253_p4)
}
   0xc   :  { %21 = dma.hbm_to_vmem [thread:$0]  %s350_s0, 128, %s19_s16, [#allocation3]  }
   0xd   :  { %s265_s22 = scalar_lea.vmem %s30_s18, 1024  ;;  %p270_p6 = scmp.lt.s32.totalorder %s30_s18, %s30_s18 }
   0xe   :  { %p266_p5 = scmp.ne.s32.totalorder %s30_s18, %s265_s22  ;;  %p271_p7 = scmp.lt.s32.totalorder %s265_s22, %s265_s22 }
  0x10   :  { %p272_p8 = por %p271_p7, %p270_p6 }
  0x12   :  { %p273_p9 = pnand %p272_p8, %p266_p5 }
  0x14   :  { %276 = shalt.err (!%p273_p9)
}
  0x15   :  { %s305_s23 = smov 64   ;;  %s306_s24 = smov 4  }
  0x16   :  { %35 = dma.hbm_to_vmem [thread:$0]  %s352_s2, 1024, %s30_s18, [#allocation6], %s305_s23, %s305_s23, %s306_s24  }
  0x17   :  { %297 = dma.done.wait [#allocation3], 128  }
  0x18   :  { %298 = vsyncadd [#allocation3], 4294967168 }
  0x19   :  { %299 = dma.done.wait [#allocation6], 1024  }
  0x1a   :  { %300 = vsyncadd [#allocation6], 4294966272  ;;  %v307_v0 = vmov 0.0   ;;  %vm308_vm0 = vmmov 0   ;;  %v229_v1 = vld [vmem:[#allocation5 + $0x38] sm:$0xff]   ;;  %v230_v2 = vld [vmem:[#allocation5 + $0x30] sm:$0xff]  }
  0x1b   :  { %202 = vmatprep.subr.bf16.mxu0 %v307_v0  ;;  %218 = vmatprep.mubr.msk.bf16.mxu0 %vm308_vm0, %v307_v0  ;;  %v231_v3 = vld [vmem:[#allocation5 + $0x28] sm:$0xff]   ;;  %v232_v4 = vld [vmem:[#allocation5 + $0x20] sm:$0xff]   ;;  %v233_v5 = vld [vmem:[#allocation5 + $0x18] sm:$0xff]   ;;  %s309_s29 = smov [#allocation7]  }
  0x1c   :  { %203 = vmatpush3.bf16.msra.mxu0 %v229_v1  ;;  %v234_v6 = vld [vmem:[#allocation5 + $0x10] sm:$0xff]   ;;  %v235_v7 = vld [vmem:[#allocation5 + $0x8] sm:$0xff]   ;;  %v45_v8 = vld [vmem:[#allocation2] sm:$0xff]  ;;  %s173_s30 = sshll.u32 %s309_s29, 4  ;;  %s174_s30 = int_to_ptr.vmem [resolvable:$true] %s173_s30 }
  0x1d   :  { %204 = vmatprep.subr.bf16.mxu0 %v307_v0  ;;  %v183_v9 = vld [vmem:[%s351_s1] ss:$0 sm:$0xff]  ;;  %v236_v11 = vld [vmem:[#allocation5] sm:$0xff]   ;;  %s277_s1 = scalar_lea.vmem %s174_s30, 128  ;;  %p282_p11 = scmp.lt.s32.totalorder %s174_s30, %s174_s30 }
  0x1e   :  { %v53_v10 = vmul.f32 %v183_v9, %v45_v8  ;;  %v184_v13 = vld [vmem:[%s353_s3] ss:$0 sm:$0xff]  ;;  %p278_p10 = scmp.ne.s32.totalorder %s174_s30, %s277_s1  ;;  %p283_p12 = scmp.lt.s32.totalorder %s277_s1, %s277_s1 }
  0x20   :  { %205 = vmatpush3.bf16.msra.mxu0 %v230_v2  ;;  %v54_v12 = vpack.c.bf16 %v53_v10, %v53_v10  ;;  %p284_p13 = por %p283_p12, %p282_p11 }
  0x21   :  { %206 = vmatprep.subr.bf16.mxu0 %v307_v0 }
  0x22   :  { %p285_p0 = pnand %p284_p13, %p278_p10 }
  0x24   :  { %207 = vmatpush3.bf16.msra.mxu0 %v231_v3 }
  0x25   :  { %208 = vmatprep.subr.bf16.mxu0 %v307_v0 }
  0x28   :  { %209 = vmatpush3.bf16.msra.mxu0 %v232_v4 }
  0x29   :  { %210 = vmatprep.subr.bf16.mxu0 %v307_v0 }
  0x2c   :  { %211 = vmatpush3.bf16.msra.mxu0 %v233_v5 }
  0x2d   :  { %212 = vmatprep.subr.bf16.mxu0 %v307_v0 }
  0x30   :  { %213 = vmatpush3.bf16.msra.mxu0 %v234_v6 }
  0x31   :  { %214 = vmatprep.subr.bf16.mxu0 %v307_v0 }
  0x34   :  { %215 = vmatpush3.bf16.msra.mxu0 %v235_v7 }
  0x35   :  { %216 = vmatprep.subr.bf16.mxu0 %v307_v0 }
  0x38   :  { %217 = vmatpush3.bf16.msra.mxu0 %v236_v11 }
  0x3b   :  { %219 = vmatmul.mubr.bf16.vlgmr.msra.gmra.mxu0 %v54_v12 }
  0xfb   :  { %v160_v14 = vpop.f32.mrf.mxu0 }
  0xfc   :  { %v161_v15 = vadd.f32 %v184_v13, %v160_v14 }
  0xfd   :  { %v220_v16 = vpop.f32.mrf.mxu0 }
  0xfe   :  { %166 = vst [vmem:[#allocation7] sm:$0xff] %v161_v15 }
  0xff   :  { %v163_v17 = vpop.f32.mrf.mxu0 }
 0x100   :  { %288 = shalt.err (!%p285_p0)
}
 0x101   :  { %176 = dma.vmem_to_hbm [thread:$0]  %s174_s30, 128, %s354_s4, [#allocation4]   ;;  %v221_v18 = vpop.f32.mrf.mxu0 }
 0x102   :  { %301 = dma.done.wait [#allocation4], 128  }
 0x103   :  { %302 = vsyncadd [#allocation4], 4294967168 }
 0x104   :  { %180 = vsyncpa [#allocation3], 1 }
 0x105   :  { %181 = vsyncpa [#allocation6], 1 }
 0x106   :  { %182 = vsyncpa [#allocation4], 1 }

</bundles_post_ra>
